<compile_context>
chip_gen: v5e
topology: v5e:2x2
jax: 0.10.0
libtpu: 0.0.40
codegen_flags: <defaults>
</compile_context>

<pallas_src>
import math

import jax
import jax.numpy as jnp
from jax.experimental import pallas as pl
from jax.experimental.pallas import tpu as pltpu


# ----------------------------- Pallas kernel -------------------------------
def _make_kernel(k, h1):
    """Build the DeepFM kernel closure for FM latent dim `k`, first MLP width `h1`."""

    def kernel(x_ref,                      # (F, TB)   batch tile, batch in lanes
               wcat_ref,                   # (h1+k+1 padded, F) fused [W1; V^T; w_lin]
               blin_ref,                   # (1, 1)
               b1_ref,                     # (h1, 1)
               w2_ref, b2_ref,             # (128, 256), (128, 1)
               w3_ref, b3_ref,             # (64, 128),  (64, 1)
               w4_ref, b4_ref,             # (64, 1),    (1, 1)
               v2_ref,                     # (F, 1)  row-sums of V^2
               out_ref):                   # (1, TB)
        x = x_ref[...]                                                    # (F, TB)

        # One fused MXU matmul for everything that multiplies x.
        fused = jnp.dot(wcat_ref[...], x,
                        preferred_element_type=jnp.float32)               # (Hc, TB)

        # ---------------- FM part (FM_Layer.fm_layer + Sigmoid) ------------
        lin = fused[h1 + k:h1 + k + 1, :] + blin_ref[...]                 # (1, TB)
        xv = fused[h1:h1 + k, :]                                          # (k, TB)
        inter1 = jnp.sum(xv * xv, axis=0, keepdims=True)                  # sum_j (xV)^2
        inter2 = jnp.sum((x * x) * v2_ref[...], axis=0, keepdims=True)    # sum_j x^2 V^2
        fm_out = jax.nn.sigmoid(lin + 0.5 * (inter2 - inter1))            # (1, TB)

        # ---------------- Deep part (MLP 256 -> 128 -> 64 -> 1 + Sigmoid) --
        h = jnp.maximum(fused[:h1, :] + b1_ref[...], 0.0)                 # (256, TB)
        h = jnp.maximum(jnp.dot(w2_ref[...], h,
                                preferred_element_type=jnp.float32)
                        + b2_ref[...], 0.0)                               # (128, TB)
        h = jnp.maximum(jnp.dot(w3_ref[...], h,
                                preferred_element_type=jnp.float32)
                        + b3_ref[...], 0.0)                               # (64, TB)
        fc_out = jax.nn.sigmoid(
            jnp.sum(h * w4_ref[...], axis=0, keepdims=True) + b4_ref[...])  # (1, TB)

        out_ref[...] = 0.5 * (fm_out + fc_out)                            # lane-dense

    return kernel


# ----------------------------- wrapper --------------------------------------
def pack_params(p):
    """One-time packing of PyTorch-layout params into the kernel layout."""
    k = p["V"].shape[1]
    # Fused weight: rows [0,256)=W1, [256,256+k)=V^T, [256+k]=w_lin; pad sublanes to 8.
    wcat = jnp.concatenate([p["w1"], p["V"].T, p["w_lin"]], axis=0)
    pad = (-wcat.shape[0]) % 8
    if pad:
        wcat = jnp.pad(wcat, ((0, pad), (0, 0)))
    packed = dict(
        wcat=wcat,
        blin=p["b_lin"].reshape(1, 1),
        b1=p["b1"].reshape(-1, 1),
        w2=p["w2"], b2=p["b2"].reshape(-1, 1),
        w3=p["w3"], b3=p["b3"].reshape(-1, 1),
        w4=p["w4"].T,                                   # (64, 1) for VPU projection
        b4=p["b4"].reshape(1, 1),
        v2=jnp.sum(p["V"] * p["V"], axis=1, keepdims=True),   # (F, 1) rowsum(V^2)
    )
    return packed, k


def deepfm_forward(x, packed, k, *, tb=128):
    """x: (B, feature_nums) f32. Returns (B,) f32."""
    B, F = x.shape
    h1 = packed["b1"].shape[0]

    # Batch-in-lanes layout; pad batch to the tile size (zero rows are harmless
    # and sliced off below).  In production x would be built transposed directly.
    bp = ((B + tb - 1) // tb) * tb
    x_t = jnp.transpose(x)                              # (F, B)
    if bp != B:
        x_t = jnp.pad(x_t, ((0, 0), (0, bp - B)))

    weights = (packed["wcat"], packed["blin"], packed["b1"],
               packed["w2"], packed["b2"], packed["w3"], packed["b3"],
               packed["w4"], packed["b4"], packed["v2"])
    weight_specs = [pl.BlockSpec(w.shape, lambda i: (0, 0)) for w in weights]

    grid_spec = pltpu.PrefetchScalarGridSpec(
        num_scalar_prefetch=0,
        grid=(bp // tb,),
        in_specs=[pl.BlockSpec((F, tb), lambda i: (0, i))] + weight_specs,
        out_specs=pl.BlockSpec((1, tb), lambda i: (0, i)),
    )

    n_param = int(sum(w.size for w in weights))
    cost = pl.CostEstimate(
        flops=int(2 * bp * (packed["wcat"].shape[0] * F + 128 * 256 + 64 * 128)
                  + 1024 * bp),
        transcendentals=int(2 * bp),
        bytes_accessed=int(4 * (bp * F + bp + n_param)),
    )

    out = pl.pallas_call(
        _make_kernel(k, h1),
        out_shape=jax.ShapeDtypeStruct((1, bp), jnp.float32),
        grid_spec=grid_spec,
        compiler_params=pltpu.CompilerParams(
            dimension_semantics=("parallel",),
            vmem_limit_bytes=32 * 1024 * 1024),
        cost_estimate=cost,
    )(x_t, *weights)
    return out[0, :B]


# ----------------------------- parameter setup ------------------------------
def init_params(key, feature_nums, k):
    """PyTorch-equivalent init: Linear weights (out,in), V ~ U(-0.1, 0.1)."""
    ks = jax.random.split(key, 11)

    def linear(kw, kb, out_f, in_f):
        bound = 1.0 / math.sqrt(in_f)
        w = jax.random.uniform(kw, (out_f, in_f), jnp.float32, -bound, bound)
        b = jax.random.uniform(kb, (out_f,), jnp.float32, -bound, bound)
        return w, b

    w_lin, b_lin = linear(ks[0], ks[1], 1, feature_nums)
    V = jax.random.uniform(ks[2], (feature_nums, k), jnp.float32, -0.1, 0.1)
    w1, b1 = linear(ks[3], ks[4], 256, feature_nums)
    w2, b2 = linear(ks[5], ks[6], 128, 256)
    w3, b3 = linear(ks[7], ks[8], 64, 128)
    w4, b4 = linear(ks[9], ks[10], 1, 64)
    return dict(w_lin=w_lin, b_lin=b_lin, V=V,
                w1=w1, b1=b1, w2=w2, b2=b2, w3=w3, b3=b3, w4=w4, b4=b4)


# ----------------------------- pure-JAX reference ----------------------------
def deepfm_reference(x, p):
    hp = jax.lax.Precision.HIGHEST
    lin = jnp.dot(x, p["w_lin"].T, precision=hp) + p["b_lin"]
    xv = jnp.dot(x, p["V"], precision=hp)
    inter2 = jnp.dot(x * x, p["V"] * p["V"], precision=hp)
    part = jnp.sum(inter2 - xv * xv, axis=1)
    fm = jax.nn.sigmoid(lin.reshape(-1) + 0.5 * part)
    h = jax.nn.relu(jnp.dot(x, p["w1"].T, precision=hp) + p["b1"])
    h = jax.nn.relu(jnp.dot(h, p["w2"].T, precision=hp) + p["b2"])
    h = jax.nn.relu(jnp.dot(h, p["w3"].T, precision=hp) + p["b3"])
    fc = jax.nn.sigmoid(jnp.dot(h, p["w4"].T, precision=hp) + p["b4"]).reshape(-1)
    return 0.5 * (fm + fc)


# --------------------------------- main --------------------------------------
if __name__ == "__main__":
    key = jax.random.PRNGKey(0)

    # Problem sizes (small, consistent with the module's forward; B exercises
    # the batch grid with two 128-row tiles).
    B = 256                   # batch
    num_dense = 8             # dense features
    sparse_feats = [          # (feat_onehot_dim, embed_dim)
        (10, 4),
        (10, 4),
    ]
    num_sparse = len(sparse_feats)
    feature_nums = num_dense + sum(d for _, d in sparse_feats)   # 16
    k = 5                     # FM latent dim

    k_dense, k_sparse, k_emb, k_params = jax.random.split(key, 4)

    dense_inputs = jax.random.normal(k_dense, (B, num_dense), jnp.float32)
    sparse_inputs = jax.random.randint(
        k_sparse, (B, num_sparse), 0, min(v for v, _ in sparse_feats))

    # Embedding tables (nn.Embedding default init ~ N(0,1)).
    emb_keys = jax.random.split(k_emb, num_sparse)
    embed_tables = [
        jax.random.normal(emb_keys[i], sparse_feats[i], jnp.float32)
        for i in range(num_sparse)
    ]

    params = init_params(k_params, feature_nums, k)
    packed, k_latent = pack_params(params)

    # Glue (plain JAX): embedding lookup + concat, matching the PyTorch forward.
    # TODO(synk): fuse the embedding gather into the kernel (HBM-resident tables
    # via memory_space=pl.ANY + scalar-prefetched indices) to avoid the extra
    # HBM round trip for x at production sparse-field counts.
    sparse_embed = jnp.concatenate(
        [embed_tables[i][sparse_inputs[:, i]] for i in range(num_sparse)], axis=1)
    x = jnp.concatenate([dense_inputs, sparse_embed], axis=-1)    # (B, feature_nums)

    out = deepfm_forward(x, packed, k_latent)
    jax.block_until_ready(out)
    assert out.shape == (B,)

    ref = deepfm_reference(x, params)
    max_err = float(jnp.max(jnp.abs(out - ref)))
    assert jnp.allclose(out, ref, atol=5e-3, rtol=5e-3), max_err

    print("KERNEL_OK")
</pallas_src>

<mosaic_0001>
module attributes {stable_mosaic.version = 11 : i64} {
  func.func @kernel(%arg0: i32, %arg1: memref<16x128xf32, #tpu.memory_space<vmem>>, %arg2: memref<264x16xf32, #tpu.memory_space<vmem>>, %arg3: memref<1x1xf32, #tpu.memory_space<vmem>>, %arg4: memref<256x1xf32, #tpu.memory_space<vmem>>, %arg5: memref<128x256xf32, #tpu.memory_space<vmem>>, %arg6: memref<128x1xf32, #tpu.memory_space<vmem>>, %arg7: memref<64x128xf32, #tpu.memory_space<vmem>>, %arg8: memref<64x1xf32, #tpu.memory_space<vmem>>, %arg9: memref<64x1xf32, #tpu.memory_space<vmem>>, %arg10: memref<1x1xf32, #tpu.memory_space<vmem>>, %arg11: memref<16x1xf32, #tpu.memory_space<vmem>>, %arg12: memref<1x128xf32, #tpu.memory_space<vmem>>) attributes {dimension_semantics = [#tpu.dimension_semantics<parallel>], iteration_bounds = array<i64: 2>, scalar_prefetch = 0 : i64, scratch_operands = 0 : i64, tpu.core_type = #tpu.core_type<tc>, window_params = [{transform_indices = @transform_0, window_bounds = array<i64: 16, 128>}, {pipeline_mode = #tpu.pipeline_mode<synchronous>, transform_indices = @transform_1, window_bounds = array<i64: 264, 16>}, {pipeline_mode = #tpu.pipeline_mode<synchronous>, transform_indices = @transform_2, window_bounds = array<i64: 1, 1>}, {pipeline_mode = #tpu.pipeline_mode<synchronous>, transform_indices = @transform_3, window_bounds = array<i64: 256, 1>}, {pipeline_mode = #tpu.pipeline_mode<synchronous>, transform_indices = @transform_4, window_bounds = array<i64: 128, 256>}, {pipeline_mode = #tpu.pipeline_mode<synchronous>, transform_indices = @transform_5, window_bounds = array<i64: 128, 1>}, {pipeline_mode = #tpu.pipeline_mode<synchronous>, transform_indices = @transform_6, window_bounds = array<i64: 64, 128>}, {pipeline_mode = #tpu.pipeline_mode<synchronous>, transform_indices = @transform_7, window_bounds = array<i64: 64, 1>}, {pipeline_mode = #tpu.pipeline_mode<synchronous>, transform_indices = @transform_8, window_bounds = array<i64: 64, 1>}, {pipeline_mode = #tpu.pipeline_mode<synchronous>, transform_indices = @transform_9, window_bounds = array<i64: 1, 1>}, {pipeline_mode = #tpu.pipeline_mode<synchronous>, transform_indices = @transform_10, window_bounds = array<i64: 16, 1>}, {transform_indices = @transform_11, window_bounds = array<i64: 1, 128>}]} {
    %c0 = arith.constant 0 : index
    %c0_0 = arith.constant 0 : index
    %0 = vector.load %arg1[%c0, %c0_0] : memref<16x128xf32, #tpu.memory_space<vmem>>, vector<16x128xf32>
    %c0_1 = arith.constant 0 : index
    %c0_2 = arith.constant 0 : index
    %1 = vector.load %arg2[%c0_1, %c0_2] : memref<264x16xf32, #tpu.memory_space<vmem>>, vector<264x16xf32>
    %cst = arith.constant dense<0.000000e+00> : vector<264x128xf32>
    %2 = tpu.matmul %1, %0, %cst {dimension_numbers = #tpu.dot_dimension_numbers<[1], [0], [0], [1], [0, 0, 1, 1], [], []>} : vector<264x16xf32>, vector<16x128xf32>, vector<264x128xf32> -> vector<264x128xf32>
    %3 = vector.extract_strided_slice %2 {offsets = [261, 0], sizes = [1, 128], strides = [1, 1]} : vector<264x128xf32> to vector<1x128xf32>
    %c0_3 = arith.constant 0 : index
    %c0_4 = arith.constant 0 : index
    %4 = vector.load %arg3[%c0_3, %c0_4] : memref<1x1xf32, #tpu.memory_space<vmem>>, vector<1x1xf32>
    %5 = vector.broadcast %4 : vector<1x1xf32> to vector<1x128xf32>
    %6 = arith.addf %3, %5 : vector<1x128xf32>
    %7 = vector.extract_strided_slice %2 {offsets = [256, 0], sizes = [5, 128], strides = [1, 1]} : vector<264x128xf32> to vector<5x128xf32>
    %8 = arith.mulf %7, %7 : vector<5x128xf32>
    %cst_5 = arith.constant dense<0.000000e+00> : vector<128xf32>
    %9 = vector.multi_reduction <add>, %8, %cst_5 [0] : vector<5x128xf32> to vector<128xf32>
    %10 = vector.shape_cast %9 : vector<128xf32> to vector<1x128xf32>
    %11 = arith.mulf %0, %0 : vector<16x128xf32>
    %c0_6 = arith.constant 0 : index
    %c0_7 = arith.constant 0 : index
    %12 = vector.load %arg11[%c0_6, %c0_7] : memref<16x1xf32, #tpu.memory_space<vmem>>, vector<16x1xf32>
    %13 = vector.broadcast %12 : vector<16x1xf32> to vector<16x128xf32>
    %14 = arith.mulf %11, %13 : vector<16x128xf32>
    %cst_8 = arith.constant dense<0.000000e+00> : vector<128xf32>
    %15 = vector.multi_reduction <add>, %14, %cst_8 [0] : vector<16x128xf32> to vector<128xf32>
    %16 = vector.shape_cast %15 : vector<128xf32> to vector<1x128xf32>
    %17 = arith.subf %16, %10 : vector<1x128xf32>
    %cst_9 = arith.constant 5.000000e-01 : f32
    %18 = vector.broadcast %cst_9 : f32 to vector<1x128xf32>
    %19 = arith.mulf %18, %17 : vector<1x128xf32>
    %20 = arith.addf %6, %19 : vector<1x128xf32>
    %21 = arith.negf %20 : vector<1x128xf32>
    %22 = math.exp %21 : vector<1x128xf32>
    %cst_10 = arith.constant 1.000000e+00 : f32
    %23 = vector.broadcast %cst_10 : f32 to vector<1x128xf32>
    %24 = arith.addf %23, %22 : vector<1x128xf32>
    %25 = arith.divf %23, %24 : vector<1x128xf32>
    %26 = vector.extract_strided_slice %2 {offsets = [0, 0], sizes = [256, 128], strides = [1, 1]} : vector<264x128xf32> to vector<256x128xf32>
    %c0_11 = arith.constant 0 : index
    %c0_12 = arith.constant 0 : index
    %27 = vector.load %arg4[%c0_11, %c0_12] : memref<256x1xf32, #tpu.memory_space<vmem>>, vector<256x1xf32>
    %28 = vector.broadcast %27 : vector<256x1xf32> to vector<256x128xf32>
    %29 = arith.addf %26, %28 : vector<256x128xf32>
    %cst_13 = arith.constant 0.000000e+00 : f32
    %30 = vector.broadcast %cst_13 : f32 to vector<256x128xf32>
    %31 = arith.maximumf %29, %30 : vector<256x128xf32>
    %c0_14 = arith.constant 0 : index
    %c0_15 = arith.constant 0 : index
    %32 = vector.load %arg5[%c0_14, %c0_15] : memref<128x256xf32, #tpu.memory_space<vmem>>, vector<128x256xf32>
    %cst_16 = arith.constant dense<0.000000e+00> : vector<128x128xf32>
    %33 = tpu.matmul %32, %31, %cst_16 {dimension_numbers = #tpu.dot_dimension_numbers<[1], [0], [0], [1], [0, 0, 1, 1], [], []>} : vector<128x256xf32>, vector<256x128xf32>, vector<128x128xf32> -> vector<128x128xf32>
    %c0_17 = arith.constant 0 : index
    %c0_18 = arith.constant 0 : index
    %34 = vector.load %arg6[%c0_17, %c0_18] : memref<128x1xf32, #tpu.memory_space<vmem>>, vector<128x1xf32>
    %35 = vector.broadcast %34 : vector<128x1xf32> to vector<128x128xf32>
    %36 = arith.addf %33, %35 : vector<128x128xf32>
    %cst_19 = arith.constant 0.000000e+00 : f32
    %37 = vector.broadcast %cst_19 : f32 to vector<128x128xf32>
    %38 = arith.maximumf %36, %37 : vector<128x128xf32>
    %c0_20 = arith.constant 0 : index
    %c0_21 = arith.constant 0 : index
    %39 = vector.load %arg7[%c0_20, %c0_21] : memref<64x128xf32, #tpu.memory_space<vmem>>, vector<64x128xf32>
    %cst_22 = arith.constant dense<0.000000e+00> : vector<64x128xf32>
    %40 = tpu.matmul %39, %38, %cst_22 {dimension_numbers = #tpu.dot_dimension_numbers<[1], [0], [0], [1], [0, 0, 1, 1], [], []>} : vector<64x128xf32>, vector<128x128xf32>, vector<64x128xf32> -> vector<64x128xf32>
    %c0_23 = arith.constant 0 : index
    %c0_24 = arith.constant 0 : index
    %41 = vector.load %arg8[%c0_23, %c0_24] : memref<64x1xf32, #tpu.memory_space<vmem>>, vector<64x1xf32>
    %42 = vector.broadcast %41 : vector<64x1xf32> to vector<64x128xf32>
    %43 = arith.addf %40, %42 : vector<64x128xf32>
    %cst_25 = arith.constant 0.000000e+00 : f32
    %44 = vector.broadcast %cst_25 : f32 to vector<64x128xf32>
    %45 = arith.maximumf %43, %44 : vector<64x128xf32>
    %c0_26 = arith.constant 0 : index
    %c0_27 = arith.constant 0 : index
    %46 = vector.load %arg9[%c0_26, %c0_27] : memref<64x1xf32, #tpu.memory_space<vmem>>, vector<64x1xf32>
    %47 = vector.broadcast %46 : vector<64x1xf32> to vector<64x128xf32>
    %48 = arith.mulf %45, %47 : vector<64x128xf32>
    %cst_28 = arith.constant dense<0.000000e+00> : vector<128xf32>
    %49 = vector.multi_reduction <add>, %48, %cst_28 [0] : vector<64x128xf32> to vector<128xf32>
    %50 = vector.shape_cast %49 : vector<128xf32> to vector<1x128xf32>
    %c0_29 = arith.constant 0 : index
    %c0_30 = arith.constant 0 : index
    %51 = vector.load %arg10[%c0_29, %c0_30] : memref<1x1xf32, #tpu.memory_space<vmem>>, vector<1x1xf32>
    %52 = vector.broadcast %51 : vector<1x1xf32> to vector<1x128xf32>
    %53 = arith.addf %50, %52 : vector<1x128xf32>
    %54 = arith.negf %53 : vector<1x128xf32>
    %55 = math.exp %54 : vector<1x128xf32>
    %cst_31 = arith.constant 1.000000e+00 : f32
    %56 = vector.broadcast %cst_31 : f32 to vector<1x128xf32>
    %57 = arith.addf %56, %55 : vector<1x128xf32>
    %58 = arith.divf %56, %57 : vector<1x128xf32>
    %59 = arith.addf %25, %58 : vector<1x128xf32>
    %cst_32 = arith.constant 5.000000e-01 : f32
    %60 = vector.broadcast %cst_32 : f32 to vector<1x128xf32>
    %61 = arith.mulf %60, %59 : vector<1x128xf32>
    %c0_33 = arith.constant 0 : index
    %c0_34 = arith.constant 0 : index
    %62 = vector.load %arg12[%c0_33, %c0_34] : memref<1x128xf32, #tpu.memory_space<vmem>>, vector<1x128xf32>
    tpu.vector_store %arg12[%c0_33, %c0_34], %61 {strides = array<i32>} : memref<1x128xf32, #tpu.memory_space<vmem>>, vector<1x128xf32>,
    return
  }
  func.func @transform_0(%arg0: i32) -> (i32, i32) {
    %c0_i32 = arith.constant 0 : i32
    %c0_i32_0 = arith.constant 0 : i32
    return %c0_i32, %arg0 : i32, i32
  }
  func.func @transform_1(%arg0: i32) -> (i32, i32) {
    %c0_i32 = arith.constant 0 : i32
    %c0_i32_0 = arith.constant 0 : i32
    %c0_i32_1 = arith.constant 0 : i32
    return %c0_i32, %c0_i32_0 : i32, i32
  }
  func.func @transform_2(%arg0: i32) -> (i32, i32) {
    %c0_i32 = arith.constant 0 : i32
    %c0_i32_0 = arith.constant 0 : i32
    %c0_i32_1 = arith.constant 0 : i32
    return %c0_i32, %c0_i32_0 : i32, i32
  }
  func.func @transform_3(%arg0: i32) -> (i32, i32) {
    %c0_i32 = arith.constant 0 : i32
    %c0_i32_0 = arith.constant 0 : i32
    %c0_i32_1 = arith.constant 0 : i32
    return %c0_i32, %c0_i32_0 : i32, i32
  }
  func.func @transform_4(%arg0: i32) -> (i32, i32) {
    %c0_i32 = arith.constant 0 : i32
    %c0_i32_0 = arith.constant 0 : i32
    %c0_i32_1 = arith.constant 0 : i32
    return %c0_i32, %c0_i32_0 : i32, i32
  }
  func.func @transform_5(%arg0: i32) -> (i32, i32) {
    %c0_i32 = arith.constant 0 : i32
    %c0_i32_0 = arith.constant 0 : i32
    %c0_i32_1 = arith.constant 0 : i32
    return %c0_i32, %c0_i32_0 : i32, i32
  }
  func.func @transform_6(%arg0: i32) -> (i32, i32) {
    %c0_i32 = arith.constant 0 : i32
    %c0_i32_0 = arith.constant 0 : i32
    %c0_i32_1 = arith.constant 0 : i32
    return %c0_i32, %c0_i32_0 : i32, i32
  }
  func.func @transform_7(%arg0: i32) -> (i32, i32) {
    %c0_i32 = arith.constant 0 : i32
    %c0_i32_0 = arith.constant 0 : i32
    %c0_i32_1 = arith.constant 0 : i32
    return %c0_i32, %c0_i32_0 : i32, i32
  }
  func.func @transform_8(%arg0: i32) -> (i32, i32) {
    %c0_i32 = arith.constant 0 : i32
    %c0_i32_0 = arith.constant 0 : i32
    %c0_i32_1 = arith.constant 0 : i32
    return %c0_i32, %c0_i32_0 : i32, i32
  }
  func.func @transform_9(%arg0: i32) -> (i32, i32) {
    %c0_i32 = arith.constant 0 : i32
    %c0_i32_0 = arith.constant 0 : i32
    %c0_i32_1 = arith.constant 0 : i32
    return %c0_i32, %c0_i32_0 : i32, i32
  }
  func.func @transform_10(%arg0: i32) -> (i32, i32) {
    %c0_i32 = arith.constant 0 : i32
    %c0_i32_0 = arith.constant 0 : i32
    %c0_i32_1 = arith.constant 0 : i32
    return %c0_i32, %c0_i32_0 : i32, i32
  }
  func.func @transform_11(%arg0: i32) -> (i32, i32) {
    %c0_i32 = arith.constant 0 : i32
    %c0_i32_0 = arith.constant 0 : i32
    return %c0_i32, %arg0 : i32, i32
  }
}

</mosaic_0001>

<bundles_post_ra>
// kernel: tpu_custom_call.1
= control target key start
LH: loop header
LB: loop body
LE: loop exit
PB: predicated region body
PF: predicated region fallthrough
CT: control target
= control target key end

     0   :  { %s2458_s0 = inlined_call_operand.vmem [shape: f32[16,256], index: 0, kind: input, shape index: {}]   ;;  %s2459_s1 = inlined_call_operand.vmem [shape: f32[264,16], index: 1, kind: input, shape index: {}]   ;;  %s2460_s2 = inlined_call_operand.<no memory space> [shape: f32[1,1], index: 2, kind: input, shape index: {}]   ;;  %s2461_s3 = inlined_call_operand.vmem [shape: f32[256,1], index: 3, kind: input, shape index: {}]   ;;  %s2462_s4 = inlined_call_operand.vmem [shape: f32[128,256], index: 4, kind: input, shape index: {}]   ;;  %s2463_s5 = inlined_call_operand.vmem [shape: f32[128,1], index: 5, kind: input, shape index: {}]   ;;  %s2464_s6 = inlined_call_operand.vmem [shape: f32[64,128], index: 6, kind: input, shape index: {}]   ;;  %s2465_s7 = inlined_call_operand.vmem [shape: f32[64,1], index: 7, kind: input, shape index: {}]   ;;  %s2466_s8 = inlined_call_operand.vmem [shape: f32[64,1], index: 8, kind: input, shape index: {}]   ;;  %s2467_s10 = inlined_call_operand.vmem [shape: f32[16,1], index: 10, kind: input, shape index: {}]   ;;  %s2468_s11 = inlined_call_operand.hbm [shape: f32[1,256], index: 11, kind: output, shape index: {}]   ;;  %s2469_s9 = inlined_call_operand.<no memory space> [shape: f32[1,1], index: 9, kind: input, shape index: {}]  }
   0x1   :  { %v16_v0 = vstv %s2460_s2  ;;  %v18_v1 = vstv %s2469_s9 }
   0x2   :  { %17 = vst [vmem:[#allocation2] sm:$0x1] %v16_v0 }
   0x3   :  { %19 = vst [vmem:[#allocation3] sm:$0x1] %v18_v1 }
   0x4   :  { %20 = vsyncpa [#allocation6], 0 }
   0x5   :  { %22 = vsyncpa [#allocation6 + $0x1], 0  ;;  %s1794_s21 = smov 0   ;;  %s1796_s22 = smov 0  }
   0x6   :  { %s1798_s23 = smov 0   ;;  %s1800_s24 = smov 0  }
   0x7 LB: > { %s1547_s2 = sadd.s32 4294967295, %s1725_s24   ;;  %s1548_s9 = sadd.s32 4294967294, %s1725_s24   ;;  %s1725_s24 = sphi %s1800_s24, %s2475_s24   ;;  %s1721_s23 = sphi %s1798_s23, %s2474_s23   ;;  %s1717_s22 = sphi %s1796_s22, %s2473_s22   ;;  %s1713_s21 = sphi %s1794_s21, %s2472_s21  }
   0x8   : > { %s1817_s25 = sadd.s32 1, %s1725_s24   ;;  %s35_s26 = sadd.s32 1, %s1721_s23 }
   0x9   : > { %s32_s27 = ssub.s32 %s1725_s24, %s1817_s25  ;;  %p42_p0 = scmp.ne.s32.totalorder %s1721_s23, %s1717_s22 }
   0xa   : > { %p33_p1 = scmp.eq.s32.totalorder %s32_s27, 0  ;;  %p43_p2 = scmp.eq.s32.totalorder %s1725_s24, 0 }
   0xb   : > { %p282_p3 = scmp.eq.s32.totalorder %s1547_s2, 1  ;;  %p287_p4 = scmp.ne.s32.totalorder %s1717_s22, %s1713_s21 }
   0xc   : > { %s1830_s28 = scalar_select %p33_p1, %s1721_s23, %s35_s26  }
   0xd   : > { %p44_p5 = por %p43_p2, %p42_p0  ;;  %p1832_p6 = por %p282_p3, %p42_p0 }
   0xe   : > { %p288_p7 = scmp.eq.s32.totalorder %s1548_s9, 1  ;;  %p1550_p9 = scmp.ge.s32.totalorder %s1725_s24, 2 }
  0x10   : > { %p1836_p8 = por %p288_p7, %p287_p4  ;;  %334 = sbr.rel (%p1550_p9) target bundleno = 27 (0x1b), region = 56 }
  0x15   : > { %337 = sbr.rel (!%p44_p5) target bundleno = 27 (0x1b), region = 60  ;;  %s339_s12 = sand.u32 (%p44_p5), 1, %s1721_s23  }
  0x16   : > { %s1552_s13 = sshll.u32 (%p44_p5), %s1725_s24, 3  ;;  %s1551_s14 = sshll.u32 (%p44_p5), %s339_s12, 4 }
  0x17   : > { %s343_s17 = scalar_lea.vmem (%p44_p5), %s2458_s0, %s1552_s13  ;;  %s341_s18 = scalar_lea.vmem (%p44_p5), [#allocation4], %s1551_s14 }
  0x18   : > { %v374_v2 = vld [vmem:[%s343_s17] sm:$0xff] (%p44_p5)  ;;  %v376_v3 = vld [vmem:[%s343_s17 + $0x10] sm:$0xff] (%p44_p5) }
  0x19   : > { %375 = vst [vmem:[%s341_s18] sm:$0xff] (%p44_p5), %v374_v2 }
  0x1a   : > { %377 = vst [vmem:[%s341_s18 + $0x8] sm:$0xff] %v376_v3 }
  0x1b PF: > { %p1553_p10 = scmp.ge.s32.totalorder %s1725_s24, 1  ;;  %p382_p11 = scmp.lt.s32.totalorder %s1725_s24, 3 }
  0x1d   : > { %p383_p12 = pnand %p1553_p10, %p382_p11 }
  0x1e   : > { %s1860_s13 = sand.u32 (!%p383_p12), 1, %s1717_s22   ;;  %s1483_s19 = scalar_lea.hbm (!%p383_p12), %s2468_s11, %s1547_s2 }
  0x1f   : > { %386 = sbr.rel (%p383_p12) target bundleno = 856 (0x358), region = 98  ;;  %s1554_s14 = sshll.u32 (!%p383_p12), %s1860_s13, 4 }
  0x20   : > { %s1863_s15 = scalar_lea.vmem (!%p383_p12), [#allocation4], %s1554_s14  ;;  %s426_s20 = scalar_lea.vmem (!%p383_p12), [#allocation5], %s1860_s13 }
  0x21   : > { %s1485_s9 = sshll.u32 (!%p383_p12), %s426_s20, 4  ;;  %s1487_s26 = sshll.u32 (!%p383_p12), %s1483_s19, 4  ;;  %s1486_s9 = int_to_ptr.vmem [resolvable:$true] %s1485_s9  ;;  %s1488_s26 = int_to_ptr.hbm [resolvable:$true] %s1487_s26 }
  0x22   : > { %s1475_s27 = scalar_lea.sflag (!%p383_p12), [#allocation6], %s1860_s13  ;;  %s1677_s2 = sshra.s32 (!%p383_p12), %s1488_s26, 4  ;;  %s1678_s2 = int_to_ptr.hbm [resolvable:$true] %s1677_s2 }
  0x23   : > { %s1679_s12 = scalar_lea.hbm (!%p383_p12), %s1678_s2, 1  ;;  %s1683_s17 = scalar_lea.hbm (!%p383_p12), %s2468_s11, 2 }
  0x24   : > { %v754_v4 = vld [vmem:[%s2461_s3 + $0x70] sm:$0xff]  ;;  %v755_v5 = vld [vmem:[%s2461_s3 + $0x78] sm:$0xff]  ;;  %v1727_v7 = vmov 0   ;;  %v429_v10 = vld [vmem:[%s2459_s1] sm:$0xff]  ;;  %vm462_vm0 = vcmask 130048   ;;  %vm687_vm1 = vcmask 1044480   ;;  %p1680_p13 = scmp.ne.s32.totalorder %s1678_s2, %s1679_s12  ;;  %p1684_p2 = scmp.lt.s32.totalorder %s1678_s2, %s2468_s11 }
  0x25   : > { %v771_v6 = vld [vmem:[%s2461_s3 + $0xf8] sm:$0xff]  ;;  %1652 = vset.pattern.permute.xlu2 %v1727_v7  ;;  %1651 = vset.pattern.permute.xlu1 %v1727_v7  ;;  %v449_v11 = vld [vmem:[%s2459_s1 + $0xa0] sm:$0xff]  ;;  %v769_v13 = vld [vmem:[%s2461_s3 + $0xe8] sm:$0xff]  ;;  %p1685_p3 = scmp.lt.s32.totalorder %s1683_s17, %s1679_s12 }
  0x26   : > { %1650 = vset.pattern.permute.xlu0 %v1727_v7  ;;  %844 = vperm.xlu2 %1652, %v754_v4   ;;  %v428_v8 = vld [vmem:[%s1863_s15 + $0x8] sm:$0xff]  ;;  %v427_v9 = vld [vmem:[%s1863_s15] sm:$0xff]  ;;  %p1681_p0 = pnand %p1680_p13, %p1832_p6 }
  0x27   : > { %849 = vperm.xlu1 %1651, %v755_v5   ;;  %929 = vperm.xlu0 %1650, %v771_v6   ;;  %v768_v12 = vld [vmem:[%s2461_s3 + $0xe0] sm:$0xff]  ;;  %v770_v14 = vld [vmem:[%s2461_s3 + $0xf0] sm:$0xff]  ;;  %v430_v15 = vld [vmem:[%s2459_s1 + $0x8] sm:$0xff]  ;;  %p1686_p4 = por %p1685_p3, %p1684_p2 }
  0x28   : > { %576 = vmatpush.msra.mxu0 %v428_v8  ;;  %1592 = vmatpush.msra.mxu3 %v428_v8  ;;  %v450_v16 = vld [vmem:[%s2459_s1 + $0xa8] sm:$0xff]  ;;  %v752_v17 = vld [vmem:[%s2461_s3 + $0x60] sm:$0xff]  ;;  %v767_v18 = vld [vmem:[%s2461_s3 + $0xd8] sm:$0xff]  ;;  %p1682_p1 = pneg %p1681_p0 }
  0x29   : > { %v753_v19 = vld [vmem:[%s2461_s3 + $0x68] sm:$0xff]  ;;  %v431_v20 = vld [vmem:[%s2459_s1 + $0x10] sm:$0xff]  ;;  %v751_v23 = vld [vmem:[%s2461_s3 + $0x58] sm:$0xff] }
  0x2a   : > { %577 = vmatpush.msra.mxu0 %v427_v9  ;;  %1593 = vmatpush.msra.mxu3 %v427_v9  ;;  %v451_v21 = vld [vmem:[%s2459_s1 + $0xb0] sm:$0xff]  ;;  %v765_v22 = vld [vmem:[%s2461_s3 + $0xc8] sm:$0xff]  ;;  %v432_v25 = vld [vmem:[%s2459_s1 + $0x18] sm:$0xff]  ;;  %p1687_p5 = pnand %p1686_p4, %p1682_p1 }
  0x2b   : > { %1555 = vmatmul.msk.f32.vlgmr.msra.gmra.mxu0 %vm462_vm0, %v429_v10  ;;  %1575 = vmatmul.msk.f32.vlgmr.msra.gmra.mxu3 %vm462_vm0, %v449_v11  ;;  %v766_v24 = vld [vmem:[%s2461_s3 + $0xd0] sm:$0xff]  ;;  %v452_v26 = vld [vmem:[%s2459_s1 + $0xb8] sm:$0xff]  ;;  %v749_v27 = vld [vmem:[%s2461_s3 + $0x48] sm:$0xff] }
  0x2c   : > { %v764_v28 = vld [vmem:[%s2461_s3 + $0xc0] sm:$0xff]  ;;  %v750_v29 = vld [vmem:[%s2461_s3 + $0x50] sm:$0xff]  ;;  %v763_v34 = vld [vmem:[%s2461_s3 + $0xb8] sm:$0xff] }
  0x2d   : > { %v433_v30 = vld [vmem:[%s2459_s1 + $0x20] sm:$0xff]  ;;  %v762_v32 = vld [vmem:[%s2461_s3 + $0xb0] sm:$0xff]  ;;  %v434_v35 = vld [vmem:[%s2459_s1 + $0x28] sm:$0xff] }
  0x2e   : > { %914 = vperm.xlu2 %1652, %v768_v12   ;;  %v453_v31 = vld [vmem:[%s2459_s1 + $0xc0] sm:$0xff]  ;;  %v454_v36 = vld [vmem:[%s2459_s1 + $0xc8] sm:$0xff]  ;;  %v746_v37 = vld [vmem:[%s2461_s3 + $0x30] sm:$0xff] }
  0x2f   : > { %919 = vperm.xlu1 %1651, %v769_v13   ;;  %924 = vperm.xlu0 %1650, %v770_v14   ;;  %v748_v33 = vld [vmem:[%s2461_s3 + $0x40] sm:$0xff]  ;;  %v761_v38 = vld [vmem:[%s2461_s3 + $0xa8] sm:$0xff]  ;;  %v747_v39 = vld [vmem:[%s2461_s3 + $0x38] sm:$0xff] }
  0x30   : > { %v435_v40 = vld [vmem:[%s2459_s1 + $0x30] sm:$0xff]  ;;  %v759_v42 = vld [vmem:[%s2461_s3 + $0x98] sm:$0xff]  ;;  %v745_v43 = vld [vmem:[%s2461_s3 + $0x28] sm:$0xff] }
  0x31   : > { %v455_v41 = vld [vmem:[%s2459_s1 + $0xd0] sm:$0xff]  ;;  %v760_v44 = vld [vmem:[%s2461_s3 + $0xa0] sm:$0xff]  ;;  %v436_v45 = vld [vmem:[%s2459_s1 + $0x38] sm:$0xff] }
  0x32   : > { %v456_v46 = vld [vmem:[%s2459_s1 + $0xd8] sm:$0xff]  ;;  %v758_v48 = vld [vmem:[%s2461_s3 + $0x90] sm:$0xff]  ;;  %v744_v49 = vld [vmem:[%s2461_s3 + $0x20] sm:$0xff] }
  0x33   : > { %1556 = vmatmul.msk.f32.gmra.mxu0 %vm462_vm0, %v430_v15  ;;  %1576 = vmatmul.msk.f32.gmra.mxu3 %vm462_vm0, %v450_v16  ;;  %v743_v47 = vld [vmem:[%s2461_s3 + $0x18] sm:$0xff]  ;;  %v437_v50 = vld [vmem:[%s2459_s1 + $0x40] sm:$0xff]  ;;  %v742_v53 = vld [vmem:[%s2461_s3 + $0x10] sm:$0xff] }
  0x34   : > { %v457_v51 = vld [vmem:[%s2459_s1 + $0xe0] sm:$0xff]  ;;  %v757_v54 = vld [vmem:[%s2461_s3 + $0x88] sm:$0xff]  ;;  %v1043_v57 = vld [vmem:[%s2463_s5 + $0x78] sm:$0xff] }
  0x35   : > { %v756_v52 = vld [vmem:[%s2461_s3 + $0x80] sm:$0xff]  ;;  %v438_v55 = vld [vmem:[%s2459_s1 + $0x48] sm:$0xff]  ;;  %v439_v60 = vld [vmem:[%s2459_s1 + $0x50] sm:$0xff] }
  0x36   : > { %834 = vperm.xlu2 %1652, %v752_v17   ;;  %v458_v56 = vld [vmem:[%s2459_s1 + $0xe8] sm:$0xff]  ;;  %v740_v58 = vld [vmem:[%s2461_s3] sm:$0xff]  ;;  %v459_v61 = vld [vmem:[%s2459_s1 + $0xf0] sm:$0xff] }
  0x37   : > { %909 = vperm.xlu1 %1651, %v767_v18   ;;  %839 = vperm.xlu0 %1650, %v753_v19   ;;  %v741_v59 = vld [vmem:[%s2461_s3 + $0x8] sm:$0xff]  ;;  %v1040_v62 = vld [vmem:[%s2463_s5 + $0x60] sm:$0xff]  ;;  %v1042_v0 = vld [vmem:[%s2463_s5 + $0x70] sm:$0xff] }
  0x38   : > { %v1041_v63 = vld [vmem:[%s2463_s5 + $0x68] sm:$0xff]  ;;  %v440_v1 = vld [vmem:[%s2459_s1 + $0x58] sm:$0xff]  ;;  %v1038_v4 = vld [vmem:[%s2463_s5 + $0x50] sm:$0xff] }
  0x39   : > { %v460_v2 = vld [vmem:[%s2459_s1 + $0xf8] sm:$0xff]  ;;  %v1037_v3 = vld [vmem:[%s2463_s5 + $0x48] sm:$0xff]  ;;  %v441_v6 = vld [vmem:[%s2459_s1 + $0x60] sm:$0xff] }
  0x3a   : > { %v1039_v5 = vld [vmem:[%s2463_s5 + $0x58] sm:$0xff]  ;;  %v461_v7 = vld [vmem:[%s2459_s1 + $0x100] sm:$0xff]  ;;  %v1034_v8 = vld [vmem:[%s2463_s5 + $0x30] sm:$0xff] }
  0x3b   : > { %1557 = vmatmul.msk.f32.gmra.mxu0 %vm462_vm0, %v431_v20  ;;  %1577 = vmatmul.msk.f32.gmra.mxu3 %vm462_vm0, %v451_v21  ;;  %v1035_v9 = vld [vmem:[%s2463_s5 + $0x38] sm:$0xff]  ;;  %v1036_v10 = vld [vmem:[%s2463_s5 + $0x40] sm:$0xff]  ;;  %v442_v11 = vld [vmem:[%s2459_s1 + $0x68] sm:$0xff] }
  0x3c   : > { %v1031_v12 = vld [vmem:[%s2463_s5 + $0x18] sm:$0xff]  ;;  %v1032_v13 = vld [vmem:[%s2463_s5 + $0x20] sm:$0xff]  ;;  %v1033_v14 = vld [vmem:[%s2463_s5 + $0x28] sm:$0xff] }
  0x3d   : > { %v443_v15 = vld [vmem:[%s2459_s1 + $0x70] sm:$0xff]  ;;  %v1028_v16 = vld [vmem:[%s2463_s5] sm:$0xff]  ;;  %v1029_v17 = vld [vmem:[%s2463_s5 + $0x8] sm:$0xff] }
  0x3e   : > { %899 = vperm.xlu2 %1652, %v765_v22   ;;  %v1030_v18 = vld [vmem:[%s2463_s5 + $0x10] sm:$0xff]  ;;  %v444_v19 = vld [vmem:[%s2459_s1 + $0x78] sm:$0xff]  ;;  %v698_v20 = vld [vmem:[%s2467_s10 + $0x8] sm:$0xff] }
  0x3f   : > { %829 = vperm.xlu1 %1651, %v751_v23   ;;  %904 = vperm.xlu0 %1650, %v766_v24   ;;  %v697_v21 = vld [vmem:[%s2467_s10] sm:$0xff] }
  0x40   : > { %v678_v22 = vld [vmem:[#allocation2] sm:$0x1] }
  0x41   : > { %v445_v24 = vld [vmem:[%s2459_s1 + $0x80] sm:$0xff] }
  0x43   : > { %1558 = vmatmul.msk.f32.gmra.mxu0 %vm462_vm0, %v432_v25  ;;  %1578 = vmatmul.msk.f32.gmra.mxu3 %vm462_vm0, %v452_v26  ;;  %v1280_v25 = vld [vmem:[%s2465_s7 + $0x10] sm:$0xff]  ;;  %v1279_v26 = vld [vmem:[%s2465_s7 + $0x8] sm:$0xff] }
  0x46   : > { %819 = vperm.xlu2 %1652, %v749_v27   ;;  %v1278_v27 = vld [vmem:[%s2465_s7] sm:$0xff] }
  0x47   : > { %894 = vperm.xlu1 %1651, %v764_v28   ;;  %824 = vperm.xlu0 %1650, %v750_v29  }
  0x4b   : > { %1559 = vmatmul.msk.f32.gmra.mxu0 %vm462_vm0, %v433_v30  ;;  %1579 = vmatmul.msk.f32.gmra.mxu3 %vm462_vm0, %v453_v31  ;;  %v446_v30 = vld [vmem:[%s2459_s1 + $0x88] sm:$0xff] }
  0x4c   : > { %v1376_v31 = vld [vmem:[%s2466_s8 + $0x8] sm:$0xff] }
  0x4e   : > { %884 = vperm.xlu2 %1652, %v762_v32   ;;  %v1375_v32 = vld [vmem:[%s2466_s8] sm:$0xff] }
  0x4f   : > { %814 = vperm.xlu1 %1651, %v748_v33   ;;  %889 = vperm.xlu0 %1650, %v763_v34   ;;  %v1281_v33 = vld [vmem:[%s2465_s7 + $0x18] sm:$0xff] }
  0x53   : > { %1560 = vmatmul.msk.f32.gmra.mxu0 %vm462_vm0, %v434_v35  ;;  %1580 = vmatmul.msk.f32.gmra.mxu3 %vm462_vm0, %v454_v36  ;;  %v447_v36 = vld [vmem:[%s2459_s1 + $0x90] sm:$0xff] }
  0x56   : > { %804 = vperm.xlu2 %1652, %v746_v37   ;;  %v1283_v37 = vld [vmem:[%s2465_s7 + $0x28] sm:$0xff] }
  0x57   : > { %879 = vperm.xlu1 %1651, %v761_v38   ;;  %809 = vperm.xlu0 %1650, %v747_v39   ;;  %v1377_v38 = vld [vmem:[%s2466_s8 + $0x10] sm:$0xff]  ;;  %v1282_v39 = vld [vmem:[%s2465_s7 + $0x20] sm:$0xff] }
  0x5b   : > { %1561 = vmatmul.msk.f32.gmra.mxu0 %vm462_vm0, %v435_v40  ;;  %1581 = vmatmul.msk.f32.gmra.mxu3 %vm462_vm0, %v455_v41 }
  0x5e   : > { %869 = vperm.xlu2 %1652, %v759_v42   ;;  %v448_v42 = vld [vmem:[%s2459_s1 + $0x98] sm:$0xff] }
  0x5f   : > { %799 = vperm.xlu1 %1651, %v745_v43   ;;  %874 = vperm.xlu0 %1650, %v760_v44   ;;  %v1379_v43 = vld [vmem:[%s2466_s8 + $0x20] sm:$0xff]  ;;  %v1284_v44 = vld [vmem:[%s2465_s7 + $0x30] sm:$0xff] }
  0x63   : > { %1562 = vmatmul.msk.f32.gmra.mxu0 %vm462_vm0, %v436_v45  ;;  %1582 = vmatmul.msk.f32.gmra.mxu3 %vm462_vm0, %v456_v46  ;;  %v1378_v45 = vld [vmem:[%s2466_s8 + $0x18] sm:$0xff] }
  0x66   : > { %789 = vperm.xlu2 %1652, %v743_v47  }
  0x67   : > { %864 = vperm.xlu1 %1651, %v758_v48   ;;  %794 = vperm.xlu0 %1650, %v744_v49   ;;  %v1381_v48 = vld [vmem:[%s2466_s8 + $0x30] sm:$0xff]  ;;  %v1380_v49 = vld [vmem:[%s2466_s8 + $0x28] sm:$0xff] }
  0x6b   : > { %1563 = vmatmul.msk.f32.gmra.mxu0 %vm462_vm0, %v437_v50  ;;  %1583 = vmatmul.msk.f32.gmra.mxu3 %vm462_vm0, %v457_v51  ;;  %v1285_v50 = vld [vmem:[%s2465_s7 + $0x38] sm:$0xff] }
  0x6e   : > { %854 = vperm.xlu2 %1652, %v756_v52  }
  0x6f   : > { %784 = vperm.xlu1 %1651, %v742_v53   ;;  %859 = vperm.xlu0 %1650, %v757_v54   ;;  %v1444_v54 = vld [vmem:[#allocation3] sm:$0x1] }
  0x73   : > { %1564 = vmatmul.msk.f32.gmra.mxu0 %vm462_vm0, %v438_v55  ;;  %1584 = vmatmul.msk.f32.gmra.mxu3 %vm462_vm0, %v458_v56  ;;  %v1382_v55 = vld [vmem:[%s2466_s8 + $0x38] sm:$0xff] }
  0x76   : > { %1121 = vperm.xlu2 %1652, %v1043_v57  }
  0x77   : > { %774 = vperm.xlu1 %1651, %v740_v58   ;;  %779 = vperm.xlu0 %1650, %v741_v59  }
  0x7b   : > { %1565 = vmatmul.msk.f32.gmra.mxu0 %vm462_vm0, %v439_v60  ;;  %1585 = vmatmul.msk.f32.gmra.mxu3 %vm462_vm0, %v459_v61 }
  0x7e   : > { %1106 = vperm.xlu2 %1652, %v1040_v62  }
  0x7f   : > { %1111 = vperm.xlu1 %1651, %v1041_v63   ;;  %1116 = vperm.xlu0 %1650, %v1042_v0  }
  0x80   : > { %v2214_v63 = vpop.permute.xlu2 %844 }
  0x83   : > { %1566 = vmatmul.msk.f32.gmra.mxu0 %vm462_vm0, %v440_v1  ;;  %1586 = vmatmul.msk.f32.gmra.mxu3 %vm462_vm0, %v460_v2 }
  0x86   : > { %1091 = vperm.xlu2 %1652, %v1037_v3  }
  0x87   : > { %1096 = vperm.xlu1 %1651, %v1038_v4   ;;  %1101 = vperm.xlu0 %1650, %v1039_v5  }
  0x88   : > { %v915_v4 = vpop.permute.xlu2 %914 }
  0x8b   : > { %1567 = vmatmul.msk.f32.gmra.mxu0 %vm462_vm0, %v441_v6  ;;  %1587 = vmatmul.msk.f32.gmra.mxu3 %vm462_vm0, %v461_v7 }
  0x8e   : > { %1076 = vperm.xlu2 %1652, %v1034_v8  }
  0x8f   : > { %1081 = vperm.xlu1 %1651, %v1035_v9   ;;  %1086 = vperm.xlu0 %1650, %v1036_v10  }
  0x90   : > { %v835_v10 = vpop.permute.xlu2 %834 }
  0x93   : > { %1568 = vmatmul.msk.f32.gmra.mxu0 %vm462_vm0, %v442_v11 }
  0x96   : > { %1061 = vperm.xlu2 %1652, %v1031_v12  }
  0x97   : > { %1066 = vperm.xlu1 %1651, %v1032_v13   ;;  %1071 = vperm.xlu0 %1650, %v1033_v14  }
  0x99   : > { %v930_v53 = vpop.permute.xlu0 %929  ;;  %v2208_v56 = vpop.permute.xlu1 %849 }
  0x9b   : > { %1569 = vmatmul.msk.f32.gmra.mxu0 %vm462_vm0, %v443_v15 }
  0x9e   : > { %1046 = vperm.xlu2 %1652, %v1028_v16   ;;  %v900_v16 = vpop.permute.xlu2 %899 }
  0x9f   : > { %1051 = vperm.xlu1 %1651, %v1029_v17   ;;  %1056 = vperm.xlu0 %1650, %v1030_v18  }
  0xa1   : > { %v925_v59 = vpop.permute.xlu0 %924  ;;  %v920_v61 = vpop.permute.xlu1 %919 }
  0xa3   : > { %1570 = vmatmul.msk.f32.gmra.mxu0 %vm462_vm0, %v444_v19 }
  0xa6   : > { %706 = vperm.xlu2 %1652, %v698_v20  }
  0xa7   : > { %701 = vperm.xlu1 %1651, %v697_v21   ;;  %681 = vperm.xlu0 %1650, %v678_v22  }
  0xa8   : > { %v2124_v23 = vpop.f32.mrf.mxu0 }
  0xa9   : > { %v2216_v0 = vpop.permute.xlu0 %839  ;;  %v910_v3 = vpop.permute.xlu1 %909 }
  0xab   : > { %1571 = vmatmul.msk.f32.gmra.mxu0 %vm462_vm0, %v445_v24 }
  0xae   : > { %1298 = vperm.xlu2 %1652, %v1280_v25   ;;  %v2139_v28 = vpop.f32.mrf.mxu3 }
  0xaf   : > { %1293 = vperm.xlu1 %1651, %v1279_v26   ;;  %1288 = vperm.xlu0 %1650, %v1278_v27  }
  0xb0   : > { %v2141_v29 = vpop.f32.mrf.mxu0 }
  0xb1   : > { %v905_v6 = vpop.permute.xlu0 %904  ;;  %v2222_v8 = vpop.permute.xlu1 %829 }
  0xb3   : > { %1572 = vmatmul.msk.f32.gmra.mxu0 %vm462_vm0, %v446_v30  ;;  %v820_v30 = vpop.permute.xlu2 %819 }
  0xb6   : > { %1390 = vperm.xlu2 %1652, %v1376_v31   ;;  %v2156_v34 = vpop.f32.mrf.mxu3 }
  0xb7   : > { %1385 = vperm.xlu1 %1651, %v1375_v32   ;;  %1303 = vperm.xlu0 %1650, %v1281_v33  }
  0xb8   : > { %v2158_v35 = vpop.f32.mrf.mxu0 }
  0xb9   : > { %v2226_v12 = vpop.permute.xlu0 %824  ;;  %v895_v13 = vpop.permute.xlu1 %894 }
  0xbb   : > { %1573 = vmatmul.msk.f32.gmra.mxu0 %vm462_vm0, %v447_v36 }
  0xbe   : > { %1313 = vperm.xlu2 %1652, %v1283_v37   ;;  %v2173_v40 = vpop.f32.mrf.mxu3 }
  0xbf   : > { %1395 = vperm.xlu1 %1651, %v1377_v38   ;;  %1308 = vperm.xlu0 %1650, %v1282_v39  }
  0xc0   : > { %v2175_v41 = vpop.f32.mrf.mxu0 }
  0xc1   : > { %v890_v17 = vpop.permute.xlu0 %889  ;;  %v2228_v21 = vpop.permute.xlu1 %814 }
  0xc3   : > { %1574 = vmatmul.msk.f32.gmra.mxu0 %vm462_vm0, %v448_v42 }
  0xc6   : > { %1405 = vperm.xlu2 %1652, %v1379_v43   ;;  %v2190_v46 = vpop.f32.mrf.mxu3 }
  0xc7   : > { %1318 = vperm.xlu1 %1651, %v1284_v44   ;;  %1400 = vperm.xlu0 %1650, %v1378_v45  }
  0xc8   : > { %v2192_v47 = vpop.f32.mrf.mxu0 }
  0xc9   : > { %v810_v33 = vpop.permute.xlu0 %809  ;;  %v880_v43 = vpop.permute.xlu1 %879 }
  0xce   : > { %1415 = vperm.xlu2 %1652, %v1381_v48   ;;  %v651_v51 = vpop.f32.mrf.mxu3  ;;  %v955_v48 = vadd.f32 %v890_v17, %v2190_v46 }
  0xcf   : > { %1410 = vperm.xlu1 %1651, %v1380_v49   ;;  %1323 = vperm.xlu0 %1650, %v1285_v50   ;;  %v956_v44 = vadd.f32 %v895_v13, %v651_v51  ;;  %v885_v50 = vpop.permute.xlu2 %884 }
  0xd0   : > { %v2203_v52 = vpop.f32.mrf.mxu0 }
  0xd6   : > { %v654_v57 = vpop.f32.mrf.mxu3 }
  0xd7   : > { %1447 = vperm.xlu1 %1651, %v1444_v54   ;;  %1420 = vperm.xlu0 %1650, %v1382_v55   ;;  %v957_v39 = vadd.f32 %v900_v16, %v654_v57  ;;  %v988_v54 = vmax.f32 %v956_v44, 0.0  ;;  %v875_v55 = vpop.permute.xlu0 %874  ;;  %v953_v57 = vadd.f32 %v880_v43, %v2156_v34 }
  0xd8   : > { %v2210_v58 = vpop.f32.mrf.mxu0  ;;  %v952_v51 = vadd.f32 %v875_v55, %v2139_v28 }
  0xd9   : > { %v989_v49 = vmax.f32 %v957_v39, 0.0 }
  0xda   : > { %v984_v46 = vmax.f32 %v952_v51, 0.0  ;;  %v1002_v51 = vld [vmem:[%s2462_s4 + $0x30] sm:$0xff] }
  0xde   : > { %v657_v60 = vpop.f32.mrf.mxu3 }
  0xdf   : > { %v958_v36 = vadd.f32 %v905_v6, %v657_v60  ;;  %v987_v60 = vmax.f32 %v955_v48, 0.0  ;;  %v795_v13 = vpop.permute.xlu0 %794 }
  0xe0   : > { %v2212_v62 = vpop.f32.mrf.mxu0 }
  0xe1   : > { %v990_v45 = vmax.f32 %v958_v36, 0.0 }
  0xe6   : > { %v660_v1 = vpop.f32.mrf.mxu3 }
  0xe7   : > { %v959_v31 = vadd.f32 %v910_v3, %v660_v1  ;;  %v800_v1 = vpop.permute.xlu1 %799  ;;  %v985_v3 = vmax.f32 %v953_v57, 0.0  ;;  %v1000_v57 = vld [vmem:[%s2462_s4 + $0x20] sm:$0xff] }
  0xe8   : > { %v2218_v2 = vpop.f32.mrf.mxu0 }
  0xe9   : > { %v991_v42 = vmax.f32 %v959_v31, 0.0 }
  0xee   : > { %v663_v5 = vpop.f32.mrf.mxu3 }
  0xef   : > { %v960_v26 = vadd.f32 %v915_v4, %v663_v5  ;;  %v805_v4 = vpop.permute.xlu2 %804  ;;  %v865_v28 = vpop.permute.xlu1 %864 }
  0xf0   : > { %v2220_v7 = vpop.f32.mrf.mxu0 }
  0xf1   : > { %v992_v37 = vmax.f32 %v960_v26, 0.0 }
  0xf6   : > { %v666_v9 = vpop.f32.mrf.mxu3 }
  0xf7   : > { %v961_v24 = vadd.f32 %v920_v61, %v666_v9  ;;  %v785_v26 = vpop.permute.xlu1 %784 }
  0xf8   : > { %v2224_v11 = vpop.f32.mrf.mxu0 }
  0xf9   : > { %v993_v32 = vmax.f32 %v961_v24, 0.0  ;;  %v870_v24 = vpop.permute.xlu2 %869 }
  0xfe   : > { %v669_v14 = vpop.f32.mrf.mxu3 }
  0xff   : > { %v962_v19 = vadd.f32 %v925_v59, %v669_v14 }
 0x100   : > { %v612_v15 = vpop.f32.mrf.mxu0 }
 0x101   : > { %v994_v27 = vmax.f32 %v962_v19, 0.0  ;;  %v943_v17 = vadd.f32 %v2222_v8, %v612_v15  ;;  %v939_v8 = vadd.f32 %v810_v33, %v2212_v62  ;;  %v790_v31 = vpop.permute.xlu2 %789 }
 0x106   : > { %v672_v18 = vpop.f32.mrf.mxu3 }
 0x107   : > { %v963_v20 = vadd.f32 %v930_v53, %v672_v18  ;;  %v954_v53 = vadd.f32 %v885_v50, %v2173_v40 }
 0x108   : > { %v615_v22 = vpop.f32.mrf.mxu0 }
 0x109   : > { %v995_v25 = vmax.f32 %v963_v20, 0.0  ;;  %v986_v61 = vmax.f32 %v954_v53, 0.0  ;;  %v944_v14 = vadd.f32 %v835_v10, %v615_v22  ;;  %v942_v20 = vadd.f32 %v2226_v12, %v2224_v11 }
 0x10a   : > { %v940_v10 = vadd.f32 %v2228_v21, %v2218_v2  ;;  %v938_v11 = vadd.f32 %v805_v4, %v2210_v58  ;;  %v936_v2 = vadd.f32 %v795_v13, %v2192_v47  ;;  %v934_v58 = vadd.f32 %v785_v26, %v2158_v35  ;;  %v996_v35 = vld [vmem:[%s2462_s4] sm:$0xff]  ;;  %v1006_v4 = vld [vmem:[%s2462_s4 + $0x50] sm:$0xff]  ;;  %v1023_v26 = vld [vmem:[%s2462_s4 + $0xd8] sm:$0xff] }
 0x10b   : > { %1189 = vmatpush.msra.mxu2 %v995_v25  ;;  %v974_v22 = vmax.f32 %v942_v20, 0.0  ;;  %v860_v25 = vpop.permute.xlu0 %859  ;;  %v1012_v13 = vld [vmem:[%s2462_s4 + $0x80] sm:$0xff]  ;;  %v1017_v20 = vld [vmem:[%s2462_s4 + $0xa8] sm:$0xff] }
 0x10c   : > { %v972_v12 = vmax.f32 %v940_v10, 0.0  ;;  %v970_v21 = vmax.f32 %v938_v11, 0.0  ;;  %v1022_v10 = vld [vmem:[%s2462_s4 + $0xd0] sm:$0xff] }
 0x10d   : > { %1190 = vmatpush.msra.mxu2 %v994_v27 }
 0x10f   : > { %1191 = vmatpush.msra.mxu2 %v993_v32  ;;  %v935_v32 = vadd.f32 %v790_v31, %v2175_v41 }
 0x110   : > { %v618_v38 = vpop.f32.mrf.mxu0 }
 0x111   : > { %1192 = vmatpush.msra.mxu2 %v992_v37  ;;  %v945_v9 = vadd.f32 %v2216_v0, %v618_v38  ;;  %v975_v0 = vmax.f32 %v943_v17, 0.0  ;;  %v968_v37 = vmax.f32 %v936_v2, 0.0  ;;  %v775_v38 = vpop.permute.xlu1 %774  ;;  %v967_v39 = vmax.f32 %v935_v32, 0.0  ;;  %v1016_v17 = vld [vmem:[%s2462_s4 + $0xa0] sm:$0xff]  ;;  %v1027_v32 = vld [vmem:[%s2462_s4 + $0xf8] sm:$0xff] }
 0x112   : > { %v932_v47 = vadd.f32 %v775_v38, %v2124_v23 }
 0x113   : > { %1193 = vmatpush.msra.mxu2 %v991_v42  ;;  %v977_v18 = vmax.f32 %v945_v9, 0.0  ;;  %v780_v33 = vpop.permute.xlu0 %779  ;;  %v966_v42 = vmax.f32 %v934_v58, 0.0  ;;  %v1010_v9 = vld [vmem:[%s2462_s4 + $0x70] sm:$0xff] }
 0x114   : > { %v964_v44 = vmax.f32 %v932_v47, 0.0 }
 0x115   : > { %1194 = vmatpush.msra.mxu2 %v990_v45 }
 0x117   : > { %1195 = vmatpush.msra.mxu2 %v989_v49 }
 0x118   : > { %v621_v59 = vpop.f32.mrf.mxu0 }
 0x119   : > { %1196 = vmatpush.msra.mxu2 %v988_v54  ;;  %v946_v40 = vadd.f32 %v2214_v63, %v621_v59  ;;  %v976_v63 = vmax.f32 %v944_v14, 0.0  ;;  %v998_v59 = vld [vmem:[%s2462_s4 + $0x10] sm:$0xff]  ;;  %v1011_v14 = vld [vmem:[%s2462_s4 + $0x78] sm:$0xff] }
 0x11b   : > { %1197 = vmatpush.msra.mxu2 %v987_v60  ;;  %v978_v16 = vmax.f32 %v946_v40, 0.0  ;;  %v997_v60 = vld [vmem:[%s2462_s4 + $0x8] sm:$0xff]  ;;  %v1008_v40 = vld [vmem:[%s2462_s4 + $0x60] sm:$0xff] }
 0x11d   : > { %1198 = vmatpush.msra.mxu2 %v986_v61  ;;  %v999_v61 = vld [vmem:[%s2462_s4 + $0x18] sm:$0xff] }
 0x11f   : > { %1199 = vmatpush.msra.mxu2 %v985_v3  ;;  %v1004_v3 = vld [vmem:[%s2462_s4 + $0x40] sm:$0xff] }
 0x120   : > { %v624_v5 = vpop.f32.mrf.mxu0 }
 0x121   : > { %1200 = vmatpush.msra.mxu2 %v984_v46  ;;  %v947_v6 = vadd.f32 %v2208_v56, %v624_v5  ;;  %v941_v56 = vadd.f32 %v820_v30, %v2220_v7  ;;  %v937_v7 = vadd.f32 %v800_v1, %v2203_v52  ;;  %v971_v30 = vmax.f32 %v939_v8, 0.0  ;;  %v1001_v1 = vld [vmem:[%s2462_s4 + $0x28] sm:$0xff]  ;;  %v1003_v46 = vld [vmem:[%s2462_s4 + $0x38] sm:$0xff] }
 0x122   : > { %v933_v52 = vadd.f32 %v780_v33, %v2141_v29  ;;  %v855_v29 = vpop.permute.xlu2 %854  ;;  %v1005_v5 = vld [vmem:[%s2462_s4 + $0x48] sm:$0xff] }
 0x123   : > { %v979_v34 = vmax.f32 %v947_v6, 0.0  ;;  %v973_v15 = vmax.f32 %v941_v56, 0.0  ;;  %v969_v62 = vmax.f32 %v937_v7, 0.0  ;;  %v1007_v6 = vld [vmem:[%s2462_s4 + $0x58] sm:$0xff]  ;;  %v1026_v7 = vld [vmem:[%s2462_s4 + $0xf0] sm:$0xff] }
 0x124   : > { %v965_v43 = vmax.f32 %v933_v52, 0.0  ;;  %v1019_v56 = vld [vmem:[%s2462_s4 + $0xb8] sm:$0xff] }
 0x125   : > { %1124 = vmatpush.msra.mxu1 %v979_v34  ;;  %v1009_v34 = vld [vmem:[%s2462_s4 + $0x68] sm:$0xff] }
 0x127   : > { %1125 = vmatpush.msra.mxu1 %v978_v16  ;;  %v1014_v16 = vld [vmem:[%s2462_s4 + $0x90] sm:$0xff] }
 0x128   : > { %v627_v19 = vpop.f32.mrf.mxu0 }
 0x129   : > { %1126 = vmatpush.msra.mxu1 %v977_v18  ;;  %v948_v53 = vadd.f32 %v855_v29, %v627_v19  ;;  %v1015_v18 = vld [vmem:[%s2462_s4 + $0x98] sm:$0xff]  ;;  %v1018_v19 = vld [vmem:[%s2462_s4 + $0xb0] sm:$0xff] }
 0x12b   : > { %1127 = vmatpush.msra.mxu1 %v976_v63  ;;  %v980_v55 = vmax.f32 %v948_v53, 0.0  ;;  %v2320_v63 = vpop.permute.xlu2 %1121 }
 0x12d   : > { %1128 = vmatpush.msra.mxu1 %v975_v0 }
 0x12f   : > { %1129 = vmatpush.msra.mxu1 %v974_v22  ;;  %v1021_v22 = vld [vmem:[%s2462_s4 + $0xc8] sm:$0xff] }
 0x130   : > { %v630_v27 = vpop.f32.mrf.mxu0 }
 0x131   : > { %1130 = vmatpush.msra.mxu1 %v973_v15  ;;  %v949_v49 = vadd.f32 %v860_v25, %v630_v27  ;;  %v2336_v25 = vpop.permute.xlu1 %1111  ;;  %v1024_v15 = vld [vmem:[%s2462_s4 + $0xe0] sm:$0xff]  ;;  %v2346_v27 = vpop.permute.xlu0 %1116 }
 0x133   : > { %1131 = vmatpush.msra.mxu1 %v972_v12  ;;  %v981_v23 = vmax.f32 %v949_v49, 0.0  ;;  %v2328_v0 = vpop.permute.xlu2 %1106 }
 0x135   : > { %1132 = vmatpush.msra.mxu1 %v971_v30  ;;  %v1025_v30 = vld [vmem:[%s2462_s4 + $0xe8] sm:$0xff] }
 0x137   : > { %1133 = vmatpush.msra.mxu1 %v970_v21 }
 0x138   : > { %v633_v36 = vpop.f32.mrf.mxu0 }
 0x139   : > { %1134 = vmatpush.msra.mxu1 %v969_v62  ;;  %v950_v45 = vadd.f32 %v865_v28, %v633_v36  ;;  %v1013_v28 = vld [vmem:[%s2462_s4 + $0x88] sm:$0xff]  ;;  %v2348_v11 = vpop.permute.xlu1 %1096  ;;  %v2356_v31 = vpop.permute.xlu0 %1101 }
 0x13b   : > { %1135 = vmatpush.msra.mxu1 %v968_v37  ;;  %v982_v54 = vmax.f32 %v950_v45, 0.0  ;;  %v2338_v8 = vpop.permute.xlu2 %1091 }
 0x13d   : > { %1136 = vmatpush.msra.mxu1 %v967_v39 }
 0x13f   : > { %1137 = vmatpush.msra.mxu1 %v966_v42 }
 0x140   : > { %v636_v41 = vpop.f32.mrf.mxu0 }
 0x141   : > { %v951_v48 = vadd.f32 %v870_v24, %v636_v41  ;;  %1138 = vmatpush.msra.mxu1 %v965_v43  ;;  %v1020_v24 = vld [vmem:[%s2462_s4 + $0xc0] sm:$0xff]  ;;  %v1082_v2 = vpop.permute.xlu1 %1081  ;;  %v1087_v33 = vpop.permute.xlu0 %1086 }
 0x143   : > { %v983_v50 = vmax.f32 %v951_v48, 0.0  ;;  %1139 = vmatpush.msra.mxu1 %v964_v44  ;;  %v1077_v12 = vpop.permute.xlu2 %1076 }
 0x144   : > { %1140 = vmatmul.f32.vlgmr.msra.gmra.mxu1 %v996_v35 }
 0x145   : > { %1201 = vmatpush.msra.mxu2 %v983_v50 }
 0x147   : > { %1202 = vmatpush.msra.mxu2 %v982_v54 }
 0x149   : > { %1203 = vmatpush.msra.mxu2 %v981_v23  ;;  %v1067_v37 = vpop.permute.xlu1 %1066  ;;  %v1072_v47 = vpop.permute.xlu0 %1071 }
 0x14b   : > { %1204 = vmatpush.msra.mxu2 %v980_v55  ;;  %v1062_v62 = vpop.permute.xlu2 %1061 }
 0x14c   : > { %1143 = vmatmul.f32.gmra.mxu1 %v998_v59  ;;  %1205 = vmatmul.f32.vlgmr.msra.gmra.mxu2 %v997_v60 }
 0x151   : > { %v1052_v43 = vpop.permute.xlu1 %1051  ;;  %v1057_v35 = vpop.permute.xlu0 %1056 }
 0x153   : > { %v1047_v58 = vpop.permute.xlu2 %1046 }
 0x154   : > { %1146 = vmatmul.f32.gmra.mxu1 %v1000_v57  ;;  %1208 = vmatmul.f32.gmra.mxu2 %v999_v61 }
 0x15c   : > { %1149 = vmatmul.f32.gmra.mxu1 %v1002_v51  ;;  %1211 = vmatmul.f32.gmra.mxu2 %v1001_v1 }
 0x164   : > { %1152 = vmatmul.f32.gmra.mxu1 %v1004_v3  ;;  %1214 = vmatmul.f32.gmra.mxu2 %v1003_v46 }
 0x16c   : > { %1155 = vmatmul.f32.gmra.mxu1 %v1006_v4  ;;  %1217 = vmatmul.f32.gmra.mxu2 %v1005_v5 }
 0x174   : > { %1158 = vmatmul.f32.gmra.mxu1 %v1008_v40  ;;  %1220 = vmatmul.f32.gmra.mxu2 %v1007_v6 }
 0x17c   : > { %1161 = vmatmul.f32.gmra.mxu1 %v1010_v9  ;;  %1223 = vmatmul.f32.gmra.mxu2 %v1009_v34 }
 0x184   : > { %1164 = vmatmul.f32.gmra.mxu1 %v1012_v13  ;;  %1226 = vmatmul.f32.gmra.mxu2 %v1011_v14 }
 0x18c   : > { %1167 = vmatmul.f32.gmra.mxu1 %v1014_v16  ;;  %1229 = vmatmul.f32.gmra.mxu2 %v1013_v28 }
 0x194   : > { %1170 = vmatmul.f32.gmra.mxu1 %v1016_v17  ;;  %1232 = vmatmul.f32.gmra.mxu2 %v1015_v18 }
 0x19c   : > { %1173 = vmatmul.f32.gmra.mxu1 %v1018_v19  ;;  %1235 = vmatmul.f32.gmra.mxu2 %v1017_v20 }
 0x1a4   : > { %1176 = vmatmul.f32.gmra.mxu1 %v1020_v24  ;;  %1238 = vmatmul.f32.gmra.mxu2 %v1019_v56 }
 0x1ac   : > { %1179 = vmatmul.f32.gmra.mxu1 %v1022_v10  ;;  %1241 = vmatmul.f32.gmra.mxu2 %v1021_v22 }
 0x1b4   : > { %1182 = vmatmul.f32.gmra.mxu1 %v1024_v15  ;;  %1244 = vmatmul.f32.gmra.mxu2 %v1023_v26 }
 0x1bc   : > { %1185 = vmatmul.f32.gmra.mxu1 %v1026_v7  ;;  %1247 = vmatmul.f32.gmra.mxu2 %v1025_v30 }
 0x1c1   : > { %v1141_v21 = vpop.f32.mrf.mxu1 }
 0x1c2   : > { %v1142_v38 = vadd.f32 %v1141_v21, %v1047_v58 }
 0x1c4   : > { %1250 = vmatmul.f32.gmra.mxu2 %v1027_v32 }
 0x1c9   : > { %v1144_v36 = vpop.f32.mrf.mxu1 }
 0x1ca   : > { %v1145_v41 = vadd.f32 %v1144_v36, %v1052_v43 }
 0x1cf   : > { %v1206_v39 = vpop.f32.mrf.mxu2 }
 0x1d0   : > { %v2361_v52 = vadd.f32 %v1206_v39, %v1142_v38 }
 0x1d1   : > { %v1147_v42 = vpop.f32.mrf.mxu1 }
 0x1d2   : > { %v1148_v49 = vadd.f32 %v1147_v42, %v1057_v35 }
 0x1d7   : > { %v1209_v44 = vpop.f32.mrf.mxu2 }
 0x1d8   : > { %v2363_v45 = vadd.f32 %v1209_v44, %v1145_v41 }
 0x1d9   : > { %v1150_v48 = vpop.f32.mrf.mxu1 }
 0x1da   : > { %v1151_v54 = vadd.f32 %v1150_v48, %v1062_v62 }
 0x1df   : > { %v1212_v50 = vpop.f32.mrf.mxu2 }
 0x1e0   : > { %v2365_v29 = vadd.f32 %v1212_v50, %v1148_v49 }
 0x1e1   : > { %v1153_v53 = vpop.f32.mrf.mxu1 }
 0x1e2   : > { %v1154_v60 = vadd.f32 %v1153_v53, %v1067_v37 }
 0x1e7   : > { %v1215_v23 = vpop.f32.mrf.mxu2 }
 0x1e8   : > { %v2367_v55 = vadd.f32 %v1215_v23, %v1151_v54 }
 0x1e9   : > { %v1156_v59 = vpop.f32.mrf.mxu1 }
 0x1ea   : > { %v1157_v1 = vadd.f32 %v1156_v59, %v1072_v47  ;;  %v1257_v23 = vmax.f32 %v2367_v55, 0.0  ;;  %v1256_v59 = vmax.f32 %v2365_v29, 0.0  ;;  %v1271_v55 = vld [vmem:[%s2464_s6 + $0x8] sm:$0xff]  ;;  %v1274_v29 = vld [vmem:[%s2464_s6 + $0x20] sm:$0xff] }
 0x1ef   : > { %v1218_v57 = vpop.f32.mrf.mxu2 }
 0x1f0   : > { %v2369_v61 = vadd.f32 %v1218_v57, %v1154_v60  ;;  %v1255_v60 = vmax.f32 %v2363_v45, 0.0  ;;  %v1254_v57 = vmax.f32 %v2361_v52, 0.0  ;;  %v1272_v45 = vld [vmem:[%s2464_s6 + $0x10] sm:$0xff]  ;;  %v1273_v52 = vld [vmem:[%s2464_s6 + $0x18] sm:$0xff] }
 0x1f1   : > { %v1159_v51 = vpop.f32.mrf.mxu1 }
 0x1f2   : > { %v1160_v5 = vadd.f32 %v1159_v51, %v1077_v12  ;;  %v1258_v54 = vmax.f32 %v2369_v61, 0.0  ;;  %v1270_v61 = vld [vmem:[%s2464_s6] sm:$0xff]  ;;  %v1275_v51 = vld [vmem:[%s2464_s6 + $0x28] sm:$0xff] }
 0x1f7   : > { %v1221_v3 = vpop.f32.mrf.mxu2 }
 0x1f8   : > { %v2371_v46 = vadd.f32 %v1221_v3, %v1157_v1  ;;  %v1276_v1 = vld [vmem:[%s2464_s6 + $0x30] sm:$0xff]  ;;  %v1277_v3 = vld [vmem:[%s2464_s6 + $0x38] sm:$0xff] }
 0x1f9   : > { %v1162_v4 = vpop.f32.mrf.mxu1 }
 0x1fa   : > { %v1163_v34 = vadd.f32 %v1162_v4, %v1082_v2  ;;  %v1259_v53 = vmax.f32 %v2371_v46, 0.0  ;;  %v2413_v46 = vpop.permute.xlu0 %681  ;;  %v2415_v4 = vpop.f32.mrf.mxu3 }
 0x1ff   : > { %v1224_v40 = vpop.f32.mrf.mxu2 }
 0x200   : > { %v2373_v6 = vadd.f32 %v1224_v40, %v1160_v5  ;;  %v702_v5 = vpop.permute.xlu1 %701  ;;  %v707_v40 = vpop.permute.xlu2 %706 }
 0x201   : > { %v1165_v9 = vpop.f32.mrf.mxu1 }
 0x202   : > { %v1166_v28 = vadd.f32 %v1165_v9, %v1087_v33  ;;  %v1289_v9 = vpop.permute.xlu0 %1288 }
 0x207   : > { %v1227_v13 = vpop.f32.mrf.mxu2 }
 0x208   : > { %v1228_v14 = vadd.f32 %v1227_v13, %v1163_v34  ;;  %v1661_v34 = vld [vmem:[%s1863_s15] sm:$0xff] }
 0x209   : > { %v1168_v16 = vpop.f32.mrf.mxu1  ;;  %v695_v13 = vmul.f32 %v1661_v34, %v1661_v34 }
 0x20a   : > { %v1261_v50 = vmax.f32 %v1228_v14, 0.0  ;;  %v1662_v14 = vld [vmem:[%s1863_s15 + $0x8] sm:$0xff] }
 0x20f   : > { %v1230_v17 = vpop.f32.mrf.mxu2 }
 0x210   : > { %v1231_v18 = vadd.f32 %v1230_v17, %v1166_v28  ;;  %v1294_v28 = vpop.permute.xlu1 %1293  ;;  %v1299_v17 = vpop.permute.xlu2 %1298 }
 0x211   : > { %v1171_v19 = vpop.f32.mrf.mxu1 }
 0x212   : > { %v1172_v41 = vadd.f32 %v1171_v19, %v2348_v11  ;;  %v1262_v11 = vmax.f32 %v1231_v18, 0.0  ;;  %v709_v18 = vmul.f32 %v702_v5, %v695_v13 }
 0x217   : > { %v1233_v20 = vpop.f32.mrf.mxu2 }
 0x219   : > { %v1174_v24 = vpop.f32.mrf.mxu1 }
 0x21a   : > { %v1175_v42 = vadd.f32 %v1174_v24, %v2356_v31 }
 0x21f   : > { %v1236_v56 = vpop.f32.mrf.mxu2 }
 0x221   : > { %v1177_v10 = vpop.f32.mrf.mxu1 }
 0x222   : > { %v1178_v58 = vadd.f32 %v1177_v10, %v2328_v0  ;;  %v1304_v10 = vpop.permute.xlu0 %1303 }
 0x227   : > { %v1239_v22 = vpop.f32.mrf.mxu2 }
 0x229   : > { %v1180_v15 = vpop.f32.mrf.mxu1 }
 0x22a   : > { %v1181_v33 = vadd.f32 %v1180_v15, %v2336_v25  ;;  %v1237_v25 = vadd.f32 %v1236_v56, %v1172_v41 }
 0x22c   : > { %v1264_v31 = vmax.f32 %v1237_v25, 0.0 }
 0x22f   : > { %v1242_v26 = vpop.f32.mrf.mxu2 }
 0x230   : > { %v1243_v47 = vadd.f32 %v1242_v26, %v1178_v58 }
 0x231   : > { %v1183_v7 = vpop.f32.mrf.mxu1 }
 0x232   : > { %v1184_v2 = vadd.f32 %v1183_v7, %v2346_v27  ;;  %v1240_v27 = vadd.f32 %v1239_v22, %v1175_v42  ;;  %v1266_v48 = vmax.f32 %v1243_v47, 0.0 }
 0x234   : > { %v1265_v35 = vmax.f32 %v1240_v27, 0.0 }
 0x237   : > { %v1245_v12 = vpop.f32.mrf.mxu2 }
 0x238   : > { %v1246_v38 = vadd.f32 %v1245_v12, %v1181_v33  ;;  %v1386_v12 = vpop.permute.xlu1 %1385 }
 0x239   : > { %v1186_v21 = vpop.f32.mrf.mxu1 }
 0x23a   : > { %v1187_v32 = vadd.f32 %v1186_v21, %v2320_v63  ;;  %v1267_v44 = vmax.f32 %v1246_v38, 0.0  ;;  %v1169_v63 = vadd.f32 %v1168_v16, %v2338_v8  ;;  %v1260_v8 = vmax.f32 %v2373_v6, 0.0 }
 0x23b   : > { %v696_v16 = vmul.f32 %v1662_v14, %v1662_v14 }
 0x23c   : > { %v1234_v0 = vadd.f32 %v1233_v20, %v1169_v63  ;;  %v686_v20 = vmul.f32 %v2415_v4, %v2415_v4 }
 0x23d   : > { %v710_v24 = vmul.f32 %v707_v40, %v696_v16 }
 0x23e   : > { %v1263_v49 = vmax.f32 %v1234_v0, 0.0  ;;  %v688_v22 = vsel %vm687_vm1, %v686_v20, 0.0 }
 0x23f   : > { %v1248_v30 = vpop.f32.mrf.mxu2  ;;  %v711_v56 = vadd.f32 %v710_v24, %v709_v18  ;;  %v689_v26 = vrot.slane %v688_v22, 4 }
 0x240   : > { %v1249_v36 = vadd.f32 %v1248_v30, %v1184_v2  ;;  %v1391_v30 = vpop.permute.xlu2 %1390 }
 0x241   : > { %v712_v15 = vrot.slane %v711_v56, 4  ;;  %v690_v2 = vadd.f32 %v689_v26, %v688_v22 }
 0x242   : > { %v1268_v43 = vmax.f32 %v1249_v36, 0.0 }
 0x243   : > { %v713_v21 = vadd.f32 %v712_v15, %v711_v56  ;;  %v691_v33 = vrot.slane %v690_v2, 2 }
 0x247   : > { %v1251_v62 = vpop.f32.mrf.mxu2 }
 0x248   : > { %v1252_v37 = vadd.f32 %v1251_v62, %v1187_v32  ;;  %v1309_v32 = vpop.permute.xlu0 %1308  ;;  %v714_v62 = vrot.slane %v713_v21, 2  ;;  %v1314_v58 = vpop.permute.xlu2 %1313 }
 0x24a   : > { %v1269_v39 = vmax.f32 %v1252_v37, 0.0  ;;  %v1396_v37 = vpop.permute.xlu1 %1395  ;;  %v715_v38 = vadd.f32 %v714_v62, %v713_v21 }
 0x24c   : > { %1326 = vmatpush.msrb.mxu1 %v1269_v39  ;;  %1594 = vmatpush.msrb.mxu3 %v1269_v39  ;;  %v692_v39 = vadd.f32 %v691_v33, %v690_v2 }
 0x24e   : > { %1327 = vmatpush.msrb.mxu1 %v1268_v43  ;;  %1595 = vmatpush.msrb.mxu3 %v1268_v43  ;;  %v716_v43 = vrot.slane %v715_v38, 1  ;;  %v693_v41 = vrot.slane %v692_v39, 1 }
 0x250   : > { %1328 = vmatpush.msrb.mxu1 %v1267_v44  ;;  %1596 = vmatpush.msrb.mxu3 %v1267_v44  ;;  %v1401_v27 = vpop.permute.xlu0 %1400 }
 0x252   : > { %1329 = vmatpush.msrb.mxu1 %v1266_v48  ;;  %1597 = vmatpush.msrb.mxu3 %v1266_v48 }
 0x254   : > { %1330 = vmatpush.msrb.mxu1 %v1265_v35  ;;  %1598 = vmatpush.msrb.mxu3 %v1265_v35  ;;  %v694_v35 = vadd.f32 %v693_v41, %v692_v39 }
 0x256   : > { %1331 = vmatpush.msrb.mxu1 %v1264_v31  ;;  %1599 = vmatpush.msrb.mxu3 %v1264_v31  ;;  %v717_v31 = vadd.f32 %v716_v43, %v715_v38 }
 0x258   : > { %1332 = vmatpush.msrb.mxu1 %v1263_v49  ;;  %1600 = vmatpush.msrb.mxu3 %v1263_v49  ;;  %v1319_v49 = vpop.permute.xlu1 %1318 }
 0x25a   : > { %1333 = vmatpush.msrb.mxu1 %v1262_v11  ;;  %1601 = vmatpush.msrb.mxu3 %v1262_v11 }
 0x25c   : > { %1334 = vmatpush.msrb.mxu1 %v1261_v50  ;;  %1602 = vmatpush.msrb.mxu3 %v1261_v50 }
 0x25e   : > { %1335 = vmatpush.msrb.mxu1 %v1260_v8  ;;  %1603 = vmatpush.msrb.mxu3 %v1260_v8 }
 0x260   : > { %1336 = vmatpush.msrb.mxu1 %v1259_v53  ;;  %1604 = vmatpush.msrb.mxu3 %v1259_v53  ;;  %v1406_v53 = vpop.permute.xlu2 %1405  ;;  %v1411_v13 = vpop.permute.xlu1 %1410 }
 0x262   : > { %1337 = vmatpush.msrb.mxu1 %v1258_v54  ;;  %1605 = vmatpush.msrb.mxu3 %v1258_v54 }
 0x264   : > { %1338 = vmatpush.msrb.mxu1 %v1257_v23  ;;  %1606 = vmatpush.msrb.mxu3 %v1257_v23 }
 0x266   : > { %1339 = vmatpush.msrb.mxu1 %v1256_v59  ;;  %1607 = vmatpush.msrb.mxu3 %v1256_v59 }
 0x268   : > { %1340 = vmatpush.msrb.mxu1 %v1255_v60  ;;  %1608 = vmatpush.msrb.mxu3 %v1255_v60  ;;  %v718_v60 = vsub.f32 %v717_v31, %v694_v35  ;;  %v1448_v62 = vpop.permute.xlu1 %1447 }
 0x26a   : > { %1341 = vmatpush.msrb.mxu1 %v1254_v57  ;;  %1609 = vmatpush.msrb.mxu3 %v1254_v57  ;;  %v719_v40 = vmul.f32 0.5, %v718_v60 }
 0x26b   : > { %1342 = vmatmul.f32.vlgmr.msrb.gmra.mxu1 %v1270_v61  ;;  %1345 = vmatmul.f32.vlgmr.msrb.gmra.mxu3 %v1271_v55 }
 0x273   : > { %1348 = vmatmul.f32.gmra.mxu3 %v1272_v45 }
 0x27b   : > { %1351 = vmatmul.f32.gmra.mxu3 %v1273_v52 }
 0x283   : > { %1354 = vmatmul.f32.gmra.mxu3 %v1274_v29  ;;  %v1324_v29 = vpop.permute.xlu0 %1323 }
 0x28b   : > { %1357 = vmatmul.f32.gmra.mxu3 %v1275_v51  ;;  %v684_v51 = vperm.slane %v2413_v46, 0  ;;  %v1421_v22 = vpop.permute.xlu0 %1420 }
 0x28d   : > { %v685_v14 = vadd.f32 %v684_v51, %v2415_v4 }
 0x293   : > { %1360 = vmatmul.f32.gmra.mxu3 %v1276_v1 }
 0x29b   : > { %1363 = vmatmul.f32.gmra.mxu3 %v1277_v3 }
 0x2e8   : > { %v1343_v42 = vpop.f32.mrf.mxu1 }
 0x2e9   : > { %v1344_v63 = vadd.f32 %v1343_v42, %v1289_v9 }
 0x2eb   : > { %v1367_v11 = vmax.f32 %v1344_v63, 0.0 }
 0x2ed   : > { %v1423_v61 = vmul.f32 %v1386_v12, %v1367_v11 }
 0x2ee   : > { %v1346_v6 = vpop.f32.mrf.mxu3 }
 0x2ef   : > { %v1347_v47 = vadd.f32 %v1346_v6, %v1294_v28 }
 0x2f1   : > { %v1368_v48 = vmax.f32 %v1347_v47, 0.0 }
 0x2f3   : > { %v1424_v54 = vmul.f32 %v1391_v30, %v1368_v48 }
 0x2f5   : > { %v1431_v1 = vadd.f32 %v1424_v54, %v1423_v61 }
 0x2f6   : > { %v1349_v19 = vpop.f32.mrf.mxu3 }
 0x2f7   : > { %v1350_v25 = vadd.f32 %v1349_v19, %v1299_v17  ;;  %v1416_v17 = vpop.permute.xlu2 %1415  ;;  %v720_v19 = vadd.f32 %v719_v40, %v685_v14 }
 0x2f9   : > { %v1369_v50 = vmax.f32 %v1350_v25, 0.0  ;;  %v1588_v15 = vmul.f32 -1.442695, %v720_v19 }
 0x2fb   : > { %v1425_v55 = vmul.f32 %v1396_v37, %v1369_v50  ;;  %1653 = vpow2.f32 %v1588_v15  ;;  %v1450_v37 = vperm.slane %v1448_v62, 0 }
 0x2fd   : > { %v1432_v6 = vadd.f32 %v1431_v1, %v1425_v55 }
 0x2fe   : > { %v1352_v7 = vpop.f32.mrf.mxu3 }
 0x2ff   : > { %v1353_v0 = vadd.f32 %v1352_v7, %v1304_v10 }
 0x301   : > { %v1370_v23 = vmax.f32 %v1353_v0, 0.0  ;;  %v1654_v4 = vpop.eup %1653 }
 0x303   : > { %v1426_v3 = vmul.f32 %v1401_v27, %v1370_v23 }
 0x305   : > { %v1433_v16 = vadd.f32 %v1432_v6, %v1426_v3 }
 0x306   : > { %v1355_v36 = vpop.f32.mrf.mxu3 }
 0x307   : > { %v1356_v8 = vadd.f32 %v1355_v36, %v1309_v32  ;;  %v724_v36 = vadd.f32 1.0, %v1654_v4 }
 0x309   : > { %v1371_v45 = vmax.f32 %v1356_v8, 0.0  ;;  %1655 = vrcp.f32 %v724_v36  ;;  %vm730_vm3 = vweird.f32 %v724_v36  ;;  %v736_v35 = vand.u32 2147483648, %v724_v36 }
 0x30b   : > { %v1427_v9 = vmul.f32 %v1406_v53, %v1371_v45  ;;  %v737_v54 = vor.u32 1.1754944e-38, %v736_v35 }
 0x30d   : > { %v1434_v20 = vadd.f32 %v1433_v16, %v1427_v9 }
 0x30e   : > { %v1358_v44 = vpop.f32.mrf.mxu3 }
 0x30f   : > { %v1359_v59 = vadd.f32 %v1358_v44, %v1314_v58  ;;  %v1656_v42 = vpop.eup %1655 }
 0x310   : > { %v726_v43 = vmul.f32 %v1656_v42, %v724_v36  ;;  %vm731_vm2 = vweird.f32 %v1656_v42 }
 0x311   : > { %v1372_v5 = vmax.f32 %v1359_v59, 0.0  ;;  %vm732_vm5 = vmor %vm730_vm3, %vm731_vm2 }
 0x312   : > { %v727_v27 = vsub.f32 1.0, %v726_v43 }
 0x313   : > { %v1428_v28 = vmul.f32 %v1411_v13, %v1372_v5 }
 0x314   : > { %v728_v44 = vmul.f32 %v1656_v42, %v727_v27 }
 0x315   : > { %v1435_v10 = vadd.f32 %v1434_v20, %v1428_v28 }
 0x316   : > { %v1361_v57 = vpop.f32.mrf.mxu3  ;;  %v729_v48 = vadd.f32 %v1656_v42, %v728_v44 }
 0x317   : > { %v1362_v52 = vadd.f32 %v1361_v57, %v1319_v49  ;;  %v734_v49 = vand.u32 2147483647, %v724_v36 }
 0x318   : > { %v733_v8 = vsel %vm732_vm5, %v1656_v42, %v729_v48 }
 0x319   : > { %v1373_v34 = vmax.f32 %v1362_v52, 0.0  ;;  %vm735_vm8 = vcmp.eq.f32.partialorder %v734_v49, 8.507059e+37 }
 0x31a   : > { %v738_v60 = vsel %vm735_vm8, %v737_v54, %v733_v8 }
 0x31b   : > { %v1429_v24 = vmul.f32 %v1416_v17, %v1373_v34 }
 0x31d   : > { %v1436_v26 = vadd.f32 %v1435_v10, %v1429_v24 }
 0x31e   : > { %v1364_v18 = vpop.f32.mrf.mxu3 }
 0x31f   : > { %v1365_v56 = vadd.f32 %v1364_v18, %v1324_v29 }
 0x321   : > { %v1374_v46 = vmax.f32 %v1365_v56, 0.0 }
 0x323   : > { %v1430_v12 = vmul.f32 %v1421_v22, %v1374_v46 }
 0x325   : > { %v1437_v7 = vadd.f32 %v1436_v26, %v1430_v12 }
 0x327   : > { %v1438_v30 = vrot.slane %v1437_v7, 4 }
 0x329   : > { %v1439_v21 = vadd.f32 %v1438_v30, %v1437_v7 }
 0x32b   : > { %v1440_v2 = vrot.slane %v1439_v21, 2 }
 0x32d   : > { %v1441_v32 = vadd.f32 %v1440_v2, %v1439_v21 }
 0x32f   : > { %v1442_v33 = vrot.slane %v1441_v32, 1 }
 0x331   : > { %v1443_v58 = vadd.f32 %v1442_v33, %v1441_v32 }
 0x333   : > { %v1451_v38 = vadd.f32 %v1450_v37, %v1443_v58 }
 0x335   : > { %v1589_v39 = vmul.f32 -1.442695, %v1451_v38 }
 0x337   : > { %1657 = vpow2.f32 %v1589_v39 }
 0x33d   : > { %v1658_v47 = vpop.eup %1657 }
 0x33e   : > { %v1455_v41 = vadd.f32 1.0, %v1658_v47 }
 0x340   : > { %1659 = vrcp.f32 %v1455_v41  ;;  %v1467_v31 = vand.u32 2147483648, %v1455_v41  ;;  %v1465_v50 = vand.u32 2147483647, %v1455_v41  ;;  %vm1461_vm6 = vweird.f32 %v1455_v41 }
 0x342   : > { %v1468_v23 = vor.u32 1.1754944e-38, %v1467_v31  ;;  %vm1466_vm9 = vcmp.eq.f32.partialorder %v1465_v50, 8.507059e+37 }
 0x346   : > { %v1660_v63 = vpop.eup %1659 }
 0x347   : > { %v1457_v25 = vmul.f32 %v1660_v63, %v1455_v41  ;;  %vm1462_vm4 = vweird.f32 %v1660_v63 }
 0x348   : > { %vm1463_vm7 = vmor %vm1461_vm6, %vm1462_vm4 }
 0x349   : > { %v1458_v0 = vsub.f32 1.0, %v1457_v25 }
 0x34b   : > { %v1459_v11 = vmul.f32 %v1660_v63, %v1458_v0 }
 0x34d   : > { %v1460_v53 = vadd.f32 %v1660_v63, %v1459_v11 }
 0x34f   : > { %v1464_v59 = vsel %vm1463_vm7, %v1660_v63, %v1460_v53 }
 0x350   : > { %v1469_v57 = vsel %vm1466_vm9, %v1468_v23, %v1464_v59 }
 0x351   : > { %v1471_v61 = vadd.f32 %v1469_v57, %v738_v60 }
 0x353   : > { %v1472_v55 = vmul.f32 0.5, %v1471_v61 }
 0x355   : > { %1473 = vst [vmem:[%s426_s20 - $0x5] sm:$0x20] %v1472_v55 }
 0x356   : > { %1690 = shalt.err (!%p1687_p5)
}
 0x357   : > { %1610 = dma.vmem_to_hbm [thread:$0]  (%p1832_p6), %s1486_s9, 16, %s1488_s26, %s1475_s27  }
 0x358 PF: > { %s1499_s13 = sand.u32 1, %s1713_s21   ;;  %p1613_p7 = pnand %p1550_p9, %p1836_p8 }
 0x359   : > { %s1500_s19 = scalar_lea.sflag [#allocation6], %s1499_s13 }
 0x35a   : > { %p1614_p10 = pneg %p1613_p7 }
 0x35c   : > { %1708 = dma.done.wait (%p1614_p10), %s1500_s19, 16  }
 0x35d   : > { %1710 = vsyncadd (%p1614_p10), %s1500_s19, 4294967280  ;;  %p25_p11 = scmp.ge.s32.totalorder %s1817_s25, 4   ;;  %s2472_s21 = smov %s1717_s22 }
 0x35e   : > { %s2473_s22 = smov %s1721_s23  ;;  %s2474_s23 = smov %s1830_s28 }
 0x35f   : > { %s2475_s24 = smov %s1817_s25  ;;  %27 = sbr.rel (!%p25_p11) target bundleno = 7 (0x7), region = 142 }
 0x364   :  { %1505 = vsyncpa [#allocation6], 1 }
 0x365   :  { %1507 = vsyncpa [#allocation6 + $0x1], 1 }

</bundles_post_ra>
